<compile_context>
chip_gen: v7x
topology: tpu7x:2x2x1
jax: 0.10.0
libtpu: 0.0.40
codegen_flags: <defaults>
</compile_context>

<pallas_src>
import functools
import math

import numpy as np

import jax
import jax.numpy as jnp
from jax.experimental import pallas as pl
from jax.experimental.pallas import tpu as pltpu


# ----------------------------------------------------------------------------
# Host-side (numpy) constant builders, cached on shape parameters.
# ----------------------------------------------------------------------------
def _haar_packet_matrix(length, level):
    """T (length x length) with coeffs_flat = x @ T.

    Flat coefficient index is b * D + j  (band-major, D = length // 2**level),
    using the natural band order of successive (approx, detail) splits.  For db1
    with length divisible by 2**level this matches pywt.WaveletPacket up to band
    ordering, which is irrelevant here: the same gate is applied to every band
    and the inverse uses the same ordering.  T is orthogonal (inverse = T^T)."""
    inv_sqrt2 = 1.0 / np.sqrt(2.0)
    coeffs = np.eye(length, dtype=np.float64)[:, None, :]        # (L, 1, L)
    for _ in range(level):
        c, b, ln = coeffs.shape
        y = coeffs.reshape(c, b, ln // 2, 2)
        a = (y[..., 0] + y[..., 1]) * inv_sqrt2
        d = (y[..., 0] - y[..., 1]) * inv_sqrt2
        coeffs = np.stack([a, d], axis=2).reshape(c, 2 * b, ln // 2)
    t = coeffs.reshape(length, -1)                               # (L, nb*D)
    assert np.allclose(t @ t.T, np.eye(length), atol=1e-9)
    return t


def _moving_average_matrix(length, window):
    """M (length x length) with smoothed = recon @ M (zero-padded conv1d, pad=window//2)."""
    half = window // 2
    m = np.zeros((length, length), dtype=np.float64)
    for i in range(length):
        lo, hi = max(0, i - half), min(length, i + half + 1)
        m[lo:hi, i] = 1.0 / window
    return m


@functools.lru_cache(maxsize=None)
def _transform_constants(length, level, window):
    """Cached (T, R=T^T@M) — depend only on (length, level, window)."""
    t = _haar_packet_matrix(length, level)
    m = _moving_average_matrix(length, window)
    return t, t.T @ m


# ----------------------------------------------------------------------------
# Fused Pallas kernel:
#   [coeffs | z_pre] = x @ A            (A = [T | T @ blockdiag(W^T)], bf16 MXU)
#   g = coeffs * sigmoid(z_pre + bias)  (f32 VPU + EUP)
#   g = 0 where |g| < threshold
#   out = g @ R                         (R = T^T @ M, bf16 MXU)
# ----------------------------------------------------------------------------
def _wgn_kernel(thr_ref, x_ref, a_ref, bias_ref, r_ref, o_ref):
    l = o_ref.shape[-1]
    x = x_ref[...]                                               # (Cp, L) f32
    # One N=2L matmul — fills the full 256-wide MXU on v6e/v7x, no serial chain.
    cz = jnp.dot(x.astype(jnp.bfloat16), a_ref[...],
                 preferred_element_type=jnp.float32)             # (Cp, 2L)
    coeffs = cz[:, :l]                                           # lane-128 split: free
    z = cz[:, l:] + bias_ref[...]                                # (1, L) broadcast
    g = coeffs * jax.nn.sigmoid(z)                               # f32 gate math
    g = jnp.where(jnp.abs(g) < thr_ref[0], 0.0, g)
    o_ref[...] = jnp.dot(g.astype(jnp.bfloat16), r_ref[...],
                         preferred_element_type=jnp.float32)     # (Cp, L)


def make_wavelet_gated_net(w, bias, threshold=0.1, level=3, ma_window=5,
                           signal_length=None):
    """One-time prep of all constants / folded weights.  Returns a jitted
    forward(x: (C, L)) -> (C, 1, L) matching the PyTorch module output."""
    w = np.asarray(w, np.float64)
    bias = np.asarray(bias, np.float64)
    d = w.shape[0]
    nb = 2 ** level
    l = d * nb if signal_length is None else signal_length
    assert l % nb == 0 and l // nb == d, "signal_length / level / W shape mismatch"
    assert w.shape == (d, d) and bias.shape == (d,)

    t, r = _transform_constants(l, level, ma_window)             # cached numpy
    # Fold per-band Linear into the analysis transform: z_pre = x @ (T @ blockdiag(W^T))
    wbig = np.kron(np.eye(nb), w.T)                              # (L, L)
    a_np = np.concatenate([t, t @ wbig], axis=1)                 # (L, 2L)

    a_const = jnp.asarray(a_np, jnp.bfloat16)                    # MXU operands in bf16
    r_const = jnp.asarray(r, jnp.bfloat16)
    bias_big = jnp.asarray(np.tile(bias, nb).reshape(1, l), jnp.float32)
    thr = jnp.asarray([threshold], jnp.float32)

    @jax.jit
    def forward(x):
        c = x.shape[0]
        cp = ((c + 7) // 8) * 8                                  # pad rows to sublane tile
        x32 = x.astype(jnp.float32)
        if cp != c:
            x32 = jnp.concatenate(
                [x32, jnp.zeros((cp - c, l), jnp.float32)], axis=0)
        out = pl.pallas_call(
            _wgn_kernel,
            out_shape=jax.ShapeDtypeStruct((cp, l), jnp.float32),
            in_specs=[
                pl.BlockSpec(memory_space=pltpu.MemorySpace.SMEM),   # threshold (1,)
                pl.BlockSpec(memory_space=pltpu.MemorySpace.VMEM),   # x        (Cp, L)
                pl.BlockSpec(memory_space=pltpu.MemorySpace.VMEM),   # A        (L, 2L) bf16
                pl.BlockSpec(memory_space=pltpu.MemorySpace.VMEM),   # bias     (1, L)
                pl.BlockSpec(memory_space=pltpu.MemorySpace.VMEM),   # R        (L, L) bf16
            ],
            out_specs=pl.BlockSpec(memory_space=pltpu.MemorySpace.VMEM),
        )(thr, x32, a_const, bias_big, r_const)
        # torch stacks per-channel (1, L) results -> (C, 1, L)
        return out[:c, None, :]

    return forward


# ----------------------------------------------------------------------------
# Pure-JAX step-by-step f32 reference (mirrors the PyTorch module) for validation.
# ----------------------------------------------------------------------------
def _reference_forward(x, w, bias, threshold, level, ma_window):
    inv_sqrt2 = 1.0 / math.sqrt(2.0)
    coeffs = x[:, None, :]
    for _ in range(level):
        c, b, ln = coeffs.shape
        y = coeffs.reshape(c, b, ln // 2, 2)
        a = (y[..., 0] + y[..., 1]) * inv_sqrt2
        dd = (y[..., 0] - y[..., 1]) * inv_sqrt2
        coeffs = jnp.stack([a, dd], axis=2).reshape(c, 2 * b, ln // 2)
    z = jnp.einsum('cbj,kj->cbk', coeffs, w) + bias                 # Linear per band
    g = coeffs * jax.nn.sigmoid(z)
    g = jnp.where(jnp.abs(g) < threshold, 0.0, g)
    yrec = g
    for _ in range(level):
        c, b, ln = yrec.shape
        a = yrec[:, 0::2, :]
        dd = yrec[:, 1::2, :]
        even = (a + dd) * inv_sqrt2
        odd = (a - dd) * inv_sqrt2
        yrec = jnp.stack([even, odd], axis=-1).reshape(c, b // 2, 2 * ln)
    recon = yrec[:, 0, :]
    half = ma_window // 2
    xp = jnp.pad(recon, ((0, 0), (half, half)))
    sm = sum(xp[:, k:k + recon.shape[1]] for k in range(ma_window)) / ma_window
    return sm[:, None, :]


if __name__ == "__main__":
    # Small, module-consistent shapes: channels=4, signal_length=128, level=3 -> D=16.
    C, L, LEVEL, MA_WINDOW = 4, 128, 3, 5
    D = L // 2 ** LEVEL

    key = jax.random.PRNGKey(0)
    kx, kw, kb = jax.random.split(key, 3)
    x = jax.random.normal(kx, (C, L), jnp.float32)

    # deterministic nn.Linear(D, D)-style init
    bound = 1.0 / math.sqrt(D)
    W = jax.random.uniform(kw, (D, D), jnp.float32, -bound, bound)
    b = jax.random.uniform(kb, (D,), jnp.float32, -bound, bound)
    threshold = 0.1                                              # nn.Parameter(0.1)

    forward = make_wavelet_gated_net(np.asarray(W), np.asarray(b),
                                     threshold=threshold, level=LEVEL,
                                     ma_window=MA_WINDOW, signal_length=L)
    out = jax.block_until_ready(forward(x))
    assert out.shape == (C, 1, L), out.shape
    assert out.dtype == jnp.float32
    assert bool(jnp.all(jnp.isfinite(out)))

    ref = jax.block_until_ready(
        _reference_forward(x, W, b, threshold, LEVEL, MA_WINDOW))
    err = jnp.abs(out - ref)
    # Tolerances account for (a) bf16 matmul operands (f32 accumulate) and
    # (b) coefficients whose |g| sits exactly at the 0.1 threshold flipping
    # between the two numerically-equivalent formulations (each flip perturbs
    # an output element by at most ~0.036).  Real bugs produce O(0.5+) max
    # error and O(0.1+) mean error.
    assert float(jnp.max(err)) < 1e-1, float(jnp.max(err))
    assert float(jnp.mean(err)) < 5e-3, float(jnp.mean(err))

    print("KERNEL_OK")
</pallas_src>

<mosaic_0001>
module attributes {stable_mosaic.version = 11 : i64} {
  func.func @_wgn_kernel(%arg0: memref<1xf32, #tpu.memory_space<smem>>, %arg1: memref<8x128xf32, #tpu.memory_space<vmem>>, %arg2: memref<128x256xbf16, #tpu.memory_space<vmem>>, %arg3: memref<1x128xf32, #tpu.memory_space<vmem>>, %arg4: memref<128x128xbf16, #tpu.memory_space<vmem>>, %arg5: memref<8x128xf32, #tpu.memory_space<vmem>>) attributes {dimension_semantics = [], scalar_prefetch = 0 : i64, scratch_operands = 0 : i64, tpu.core_type = #tpu.core_type<tc>} {
    %c0 = arith.constant 0 : index
    %c0_0 = arith.constant 0 : index
    %0 = vector.load %arg1[%c0, %c0_0] : memref<8x128xf32, #tpu.memory_space<vmem>>, vector<8x128xf32>
    %1 = arith.truncf %0 : vector<8x128xf32> to vector<8x128xbf16>
    %c0_1 = arith.constant 0 : index
    %c0_2 = arith.constant 0 : index
    %2 = vector.load %arg2[%c0_1, %c0_2] : memref<128x256xbf16, #tpu.memory_space<vmem>>, vector<128x256xbf16>
    %cst = arith.constant dense<0.000000e+00> : vector<8x256xf32>
    %3 = tpu.matmul %1, %2, %cst {dimension_numbers = #tpu.dot_dimension_numbers<[1], [0], [0], [1], [0, 0, 1, 1], [], []>} : vector<8x128xbf16>, vector<128x256xbf16>, vector<8x256xf32> -> vector<8x256xf32>
    %4 = vector.extract_strided_slice %3 {offsets = [0, 0], sizes = [8, 128], strides = [1, 1]} : vector<8x256xf32> to vector<8x128xf32>
    %5 = vector.extract_strided_slice %3 {offsets = [0, 128], sizes = [8, 128], strides = [1, 1]} : vector<8x256xf32> to vector<8x128xf32>
    %c0_3 = arith.constant 0 : index
    %c0_4 = arith.constant 0 : index
    %6 = vector.load %arg3[%c0_3, %c0_4] : memref<1x128xf32, #tpu.memory_space<vmem>>, vector<1x128xf32>
    %7 = vector.broadcast %6 : vector<1x128xf32> to vector<8x128xf32>
    %8 = arith.addf %5, %7 : vector<8x128xf32>
    %9 = arith.negf %8 : vector<8x128xf32>
    %10 = math.exp %9 : vector<8x128xf32>
    %cst_5 = arith.constant 1.000000e+00 : f32
    %11 = vector.broadcast %cst_5 : f32 to vector<8x128xf32>
    %12 = arith.addf %11, %10 : vector<8x128xf32>
    %13 = arith.divf %11, %12 : vector<8x128xf32>
    %14 = arith.mulf %4, %13 : vector<8x128xf32>
    %15 = math.absf %14 : vector<8x128xf32>
    %c0_6 = arith.constant 0 : index
    %16 = memref.load %arg0[%c0_6] : memref<1xf32, #tpu.memory_space<smem>>
    %17 = vector.broadcast %16 : f32 to vector<8x128xf32>
    %18 = arith.cmpf olt, %15, %17 : vector<8x128xf32>
    %cst_7 = arith.constant 0.000000e+00 : f32
    %19 = vector.broadcast %cst_7 : f32 to vector<8x128xf32>
    %20 = arith.select %18, %19, %14 : vector<8x128xi1>, vector<8x128xf32>
    %21 = arith.truncf %20 : vector<8x128xf32> to vector<8x128xbf16>
    %c0_8 = arith.constant 0 : index
    %c0_9 = arith.constant 0 : index
    %22 = vector.load %arg4[%c0_8, %c0_9] : memref<128x128xbf16, #tpu.memory_space<vmem>>, vector<128x128xbf16>
    %cst_10 = arith.constant dense<0.000000e+00> : vector<8x128xf32>
    %23 = tpu.matmul %21, %22, %cst_10 {dimension_numbers = #tpu.dot_dimension_numbers<[1], [0], [0], [1], [0, 0, 1, 1], [], []>} : vector<8x128xbf16>, vector<128x128xbf16>, vector<8x128xf32> -> vector<8x128xf32>
    %c0_11 = arith.constant 0 : index
    %c0_12 = arith.constant 0 : index
    %24 = vector.load %arg5[%c0_11, %c0_12] : memref<8x128xf32, #tpu.memory_space<vmem>>, vector<8x128xf32>
    tpu.vector_store %arg5[%c0_11, %c0_12], %23 {strides = array<i32>} : memref<8x128xf32, #tpu.memory_space<vmem>>, vector<8x128xf32>,
    return
  }
}

</mosaic_0001>

<bundles_post_ra>
// kernel: forward.1
= control target key start
LH: loop header
LB: loop body
LE: loop exit
PB: predicated region body
PF: predicated region fallthrough
CT: control target
= control target key end

     0   :  { %v390_v1 = vmov 0   ;;  %v391_v20 = vmov 0.0   ;;  %vm392_vm0 = vmmov 0   ;;  %s507_s2 = inlined_call_operand.vmem [shape: bf16[128,256], index: 2, kind: input, shape index: {}]   ;;  %s508_s1 = inlined_call_operand.vmem [shape: f32[8,128], index: 1, kind: input, shape index: {}]   ;;  %s509_s4 = inlined_call_operand.vmem [shape: bf16[128,128], index: 4, kind: input, shape index: {}]   ;;  %s510_s3 = inlined_call_operand.vmem [shape: f32[1,128], index: 3, kind: input, shape index: {}]   ;;  %s511_s0 = inlined_call_operand.<no memory space> [shape: f32[1], index: 0, kind: input, shape index: {}]   ;;  %s512_s5 = inlined_call_operand.vmem [shape: f32[8,128], index: 5, kind: output, shape index: {}]  }
   0x1   :  { %v354_v0 = vld [vmem:[%s507_s2 + $0x4] ss:$8 sps:$4 sm:$0xff]   ;;  %152 = vmatprep.mubr.bf16.mxu0 %v390_v1  ;;  %v356_v2 = vld [vmem:[%s507_s2] ss:$8 sps:$4 sm:$0xff]   ;;  %v357_v3 = vld [vmem:[%s507_s2 + $0x14] ss:$8 sps:$4 sm:$0xff]   ;;  %331 = vmatprep.subr.bf16.mxu1 %v391_v20  ;;  %v178_v39 = vstv %s511_s0 }
   0x2   :  { %120 = vmatprep.subr.bf16.mxu0 %v354_v0  ;;  %v359_v4 = vld [vmem:[%s507_s2 + $0x10] ss:$8 sps:$4 sm:$0xff]   ;;  %v360_v5 = vld [vmem:[%s507_s2 + $0x24] ss:$8 sps:$4 sm:$0xff]   ;;  %v362_v6 = vld [vmem:[%s507_s2 + $0x20] ss:$8 sps:$4 sm:$0xff]   ;;  %347 = vmatprep.mubr.msk.bf16.mxu1 %vm392_vm0, %v391_v20 }
   0x3   :  { %121 = vmatpush1.bf16.msra.mxu0 %v356_v2  ;;  %v363_v7 = vld [vmem:[%s507_s2 + $0x34] ss:$8 sps:$4 sm:$0xff]   ;;  %v365_v8 = vld [vmem:[%s507_s2 + $0x30] ss:$8 sps:$4 sm:$0xff]   ;;  %v366_v9 = vld [vmem:[%s507_s2 + $0x44] ss:$8 sps:$4 sm:$0xff]  }
   0x4   :  { %122 = vmatprep.subr.bf16.mxu0 %v357_v3  ;;  %v368_v10 = vld [vmem:[%s507_s2 + $0x40] ss:$8 sps:$4 sm:$0xff]   ;;  %v369_v11 = vld [vmem:[%s507_s2 + $0x54] ss:$8 sps:$4 sm:$0xff]   ;;  %v371_v12 = vld [vmem:[%s507_s2 + $0x50] ss:$8 sps:$4 sm:$0xff]  }
   0x5   :  { %v372_v13 = vld [vmem:[%s507_s2 + $0x64] ss:$8 sps:$4 sm:$0xff]   ;;  %v374_v14 = vld [vmem:[%s507_s2 + $0x60] ss:$8 sps:$4 sm:$0xff]   ;;  %v375_v15 = vld [vmem:[%s507_s2 + $0x74] ss:$8 sps:$4 sm:$0xff]  }
   0x6   :  { %v377_v16 = vld [vmem:[%s507_s2 + $0x70] ss:$8 sps:$4 sm:$0xff]   ;;  %v22_v17 = vld [vmem:[%s508_s1] sm:$0xff]  ;;  %v379_v21 = vld [vmem:[%s509_s4 + $0x8] sm:$0xff]  }
   0x7   :  { %123 = vmatpush1.bf16.msra.mxu0 %v359_v4  ;;  %v23_v18 = vpack.c.bf16 %v22_v17, %v22_v17  ;;  %v378_v19 = vld [vmem:[%s509_s4] sm:$0xff]   ;;  %v380_v22 = vld [vmem:[%s509_s4 + $0x10] sm:$0xff]   ;;  %v381_v23 = vld [vmem:[%s509_s4 + $0x18] sm:$0xff]  }
   0x8   :  { %124 = vmatprep.subr.bf16.mxu0 %v360_v5  ;;  %332 = vmatpush3.bf16.msra.mxu1 %v378_v19  ;;  %v382_v24 = vld [vmem:[%s509_s4 + $0x20] sm:$0xff]   ;;  %v383_v25 = vld [vmem:[%s509_s4 + $0x28] sm:$0xff]   ;;  %v384_v26 = vld [vmem:[%s509_s4 + $0x30] sm:$0xff]  }
   0x9   :  { %333 = vmatprep.subr.bf16.mxu1 %v391_v20  ;;  %v385_v27 = vld [vmem:[%s509_s4 + $0x38] sm:$0xff]   ;;  %v307_v28 = vld [vmem:[%s510_s3] ss:$0 sm:$0xff] }
   0xb   :  { %125 = vmatpush1.bf16.msra.mxu0 %v362_v6 }
   0xc   :  { %126 = vmatprep.subr.bf16.mxu0 %v363_v7  ;;  %334 = vmatpush3.bf16.msra.mxu1 %v379_v21 }
   0xd   :  { %335 = vmatprep.subr.bf16.mxu1 %v391_v20 }
   0xf   :  { %127 = vmatpush1.bf16.msra.mxu0 %v365_v8 }
  0x10   :  { %128 = vmatprep.subr.bf16.mxu0 %v366_v9  ;;  %336 = vmatpush3.bf16.msra.mxu1 %v380_v22 }
  0x11   :  { %337 = vmatprep.subr.bf16.mxu1 %v391_v20 }
  0x13   :  { %129 = vmatpush1.bf16.msra.mxu0 %v368_v10 }
  0x14   :  { %130 = vmatprep.subr.bf16.mxu0 %v369_v11  ;;  %338 = vmatpush3.bf16.msra.mxu1 %v381_v23 }
  0x15   :  { %339 = vmatprep.subr.bf16.mxu1 %v391_v20 }
  0x17   :  { %131 = vmatpush1.bf16.msra.mxu0 %v371_v12 }
  0x18   :  { %132 = vmatprep.subr.bf16.mxu0 %v372_v13  ;;  %340 = vmatpush3.bf16.msra.mxu1 %v382_v24 }
  0x19   :  { %341 = vmatprep.subr.bf16.mxu1 %v391_v20 }
  0x1b   :  { %133 = vmatpush1.bf16.msra.mxu0 %v374_v14 }
  0x1c   :  { %134 = vmatprep.subr.bf16.mxu0 %v375_v15  ;;  %342 = vmatpush3.bf16.msra.mxu1 %v383_v25 }
  0x1d   :  { %343 = vmatprep.subr.bf16.mxu1 %v391_v20 }
  0x1f   :  { %135 = vmatpush1.bf16.msra.mxu0 %v377_v16 }
  0x20   :  { %344 = vmatpush3.bf16.msra.mxu1 %v384_v26 }
  0x21   :  { %345 = vmatprep.subr.bf16.mxu1 %v391_v20 }
  0x22   :  { %153 = vmatmul.mubr.bf16.vlgmr.msra.gmra.mrb[0].mxu0 %v23_v18 }
  0x24   :  { %346 = vmatpush3.bf16.msra.mxu1 %v385_v27 }
  0xf5   :  { %v154_v29 = vpop.f32.mrb[0].mxu0 }
  0xf6   :  { %v156_v30 = vpop.f32.mrb[1].mxu0 }
  0xf7   :  { %v168_v31 = vadd.f32 %v307_v28, %v156_v30  ;;  %v158_v32 = vpop.f32.mrb[2].mxu0 }
  0xf8   :  { %v159_v33 = vpop.f32.mrb[3].mxu0 }
  0xf9   :  { %v308_v34 = vmul.f32 -1.442695, %v168_v31 }
  0xfb   :  { %386 = vpow2.f32 %v308_v34 }
 0x105   :  { %v387_v35 = vpop.eup %386 }
 0x106   :  { %v172_v36 = vadd.f32 1.0, %v387_v35 }
 0x108   :  { %388 = vrcp.f32 %v172_v36 }
 0x112   :  { %v389_v37 = vpop.eup %388 }
 0x113   :  { %v175_v38 = vmul.f32 %v389_v37, %v154_v29 }
 0x115   :  { %v176_v40 = vand.u32 2147483647, %v175_v38  ;;  %v320_v41 = vpack.c.bf16 %v175_v38, %v175_v38 }
 0x117   :  { %vm179_vm1 = vcmp.lt.f32.partialorder %v176_v40, %v178_v39 }
 0x118   :  { %vm317_vm2 = vmneg %vm179_vm1 }
 0x119   :  { %vm319_vm3 = vmpackc.low %vm317_vm2, %vm317_vm2 }
 0x11a   :  { %348 = vmatmul.mubr.msk.bf16.vlgmr.msra.gmra.mrb[0].mxu1 %vm319_vm3, %v320_v41 }
 0x1ed   :  { %v280_v42 = vpop.f32.mrb[0].mxu1 }
 0x1ee   :  { %286 = vst [vmem:[%s512_s5] sm:$0xff] %v280_v42  ;;  %v349_v43 = vpop.f32.mrb[1].mxu1 }
 0x1ef   :  { %v283_v44 = vpop.f32.mrb[2].mxu1 }
 0x1f0   :  { %v350_v45 = vpop.f32.mrb[3].mxu1 }

</bundles_post_ra>
